<compile_context>
chip_gen: v5e
topology: v5e:2x2
jax: 0.10.0
libtpu: 0.0.40
codegen_flags: <defaults>
</compile_context>

<pallas_src>
import functools

import jax
import jax.numpy as jnp
from jax.experimental import pallas as pl
from jax.experimental.pallas import tpu as pltpu


_LANE = 128            # MXU / lane width
_SUBLANE_BF16 = 16     # bf16 sublane packing
_VMEM_LIMIT = 48 * 1024 * 1024   # > every scoped default, < v7x 64 MiB physical


# ---------------------------------------------------------------------------
# helpers
# ---------------------------------------------------------------------------
def _round_up(x, m):
    return ((x + m - 1) // m) * m


def _divisor_tile(dim, cap, mult):
    """Largest t <= cap with t % mult == 0 and dim % t == 0 (dim % mult == 0 assumed,
    else returns dim when dim <= mult)."""
    if dim <= mult:
        return dim
    t = (min(cap, dim) // mult) * mult
    while t > mult:
        if dim % t == 0:
            return t
        t -= mult
    return mult


def _maybe_pad_rows(x, m_pad):
    if x.shape[0] == m_pad:
        return x
    return jnp.pad(x, ((0, m_pad - x.shape[0]), (0, 0)))


def _weight_spec(shape, index_map, extra_buffers):
    """Weight-stream BlockSpec; 3-deep pipelining for long decode-time weight streams."""
    if extra_buffers:
        try:
            return pl.BlockSpec(shape, index_map, pipeline_mode=pl.Buffered(3))
        except TypeError:  # jax version without pipeline_mode kwarg
            pass
    return pl.BlockSpec(shape, index_map)


# ---------------------------------------------------------------------------
# Pallas kernels
# ---------------------------------------------------------------------------
def _matmul_kernel(x_ref, w_ref, o_ref, acc_ref):
    """Tiled X[M,K] @ W[K,N]; bf16 operands, f32 accumulator in VMEM scratch."""
    @pl.when(pl.program_id(2) == 0)
    def _():
        acc_ref[...] = jnp.zeros_like(acc_ref)

    acc_ref[...] += jnp.dot(x_ref[...], w_ref[...],
                            preferred_element_type=jnp.float32)

    @pl.when(pl.program_id(2) == pl.num_programs(2) - 1)
    def _():
        o_ref[...] = acc_ref[...].astype(o_ref.dtype)


def pallas_matmul(x, w, *, out_dtype=jnp.bfloat16):
    M, K = x.shape
    K2, N = w.shape
    assert K == K2 and N % _LANE == 0 and K % _LANE == 0
    m_pad = _round_up(M, _SUBLANE_BF16)
    tm = _divisor_tile(m_pad, 512, _SUBLANE_BF16)
    decode_sized = m_pad <= 256
    tn = _divisor_tile(N, 2048 if decode_sized else 1024, _LANE)
    tk = _divisor_tile(K, 1024, _LANE)
    extra_buf = decode_sized and (N // tn) * (K // tk) >= 4
    x_p = _maybe_pad_rows(x, m_pad)

    out = pl.pallas_call(
        _matmul_kernel,
        out_shape=jax.ShapeDtypeStruct((m_pad, N), out_dtype),
        grid_spec=pltpu.PrefetchScalarGridSpec(
            num_scalar_prefetch=0,
            grid=(m_pad // tm, N // tn, K // tk),
            in_specs=[
                pl.BlockSpec((tm, tk), lambda i, j, k: (i, k)),
                _weight_spec((tk, tn), lambda i, j, k: (k, j), extra_buf),
            ],
            out_specs=pl.BlockSpec((tm, tn), lambda i, j, k: (i, j)),
            scratch_shapes=[pltpu.VMEM((tm, tn), jnp.float32)],
        ),
        compiler_params=pltpu.CompilerParams(
            dimension_semantics=("parallel", "parallel", "arbitrary"),
            vmem_limit_bytes=_VMEM_LIMIT),
    )(x_p, w)
    return out if m_pad == M else out[:M]


def _matmul_silu_resid_kernel(x_ref, w_ref, r_ref, o_ref, acc_ref):
    """h = resid + silu(X @ W), j-tiled; bf16 in, f32 accumulate, fused epilogue."""
    @pl.when(pl.program_id(2) == 0)
    def _():
        acc_ref[...] = jnp.zeros_like(acc_ref)

    acc_ref[...] += jnp.dot(x_ref[...], w_ref[...],
                            preferred_element_type=jnp.float32)

    @pl.when(pl.program_id(2) == pl.num_programs(2) - 1)
    def _():
        a = acc_ref[...]
        o_ref[...] = (r_ref[...].astype(jnp.float32)
                      + a * jax.nn.sigmoid(a)).astype(o_ref.dtype)


def _rmsnorm_kernel(h_ref, g_ref, o_ref, *, eps):
    """Row-wise RMSNorm with gain (full feature row per block)."""
    h = h_ref[...].astype(jnp.float32)
    var = jnp.mean(h * h, axis=-1, keepdims=True)
    o_ref[...] = (h * jax.lax.rsqrt(var + eps)
                  * g_ref[...].astype(jnp.float32)).astype(o_ref.dtype)


def pallas_decoder_block(x, w, g, *, eps=1e-6, out_dtype=jnp.bfloat16):
    """Synthetic decoder block: h = x + silu(x @ w); n = rmsnorm(h) * g.

    Returns (h, n) = (hidden_states_onnorm rows, hidden_states rows).
    De-fused per v7x VMEM budget: j-tiled matmul kernel + a light row-wise
    RMSNorm pass (extra (M,H) round trip is tiny vs the HxH weight stream).
    """
    M, K = x.shape
    K2, H = w.shape
    assert K == K2 and H % _LANE == 0 and K % _LANE == 0
    m_pad = _round_up(M, _SUBLANE_BF16)
    x_p = _maybe_pad_rows(x, m_pad)

    tm = _divisor_tile(m_pad, 512, _SUBLANE_BF16)
    tn = _divisor_tile(H, 1024, _LANE)
    tk = _divisor_tile(K, 1024, _LANE)
    h = pl.pallas_call(
        _matmul_silu_resid_kernel,
        out_shape=jax.ShapeDtypeStruct((m_pad, H), out_dtype),
        grid_spec=pltpu.PrefetchScalarGridSpec(
            num_scalar_prefetch=0,
            grid=(m_pad // tm, H // tn, K // tk),
            in_specs=[
                pl.BlockSpec((tm, tk), lambda i, j, k: (i, k)),   # x (matmul operand)
                pl.BlockSpec((tk, tn), lambda i, j, k: (k, j)),   # w_dec
                pl.BlockSpec((tm, tn), lambda i, j, k: (i, j)),   # residual (= x cols j)
            ],
            out_specs=pl.BlockSpec((tm, tn), lambda i, j, k: (i, j)),
            scratch_shapes=[pltpu.VMEM((tm, tn), jnp.float32)],
        ),
        compiler_params=pltpu.CompilerParams(
            dimension_semantics=("parallel", "parallel", "arbitrary"),
            vmem_limit_bytes=_VMEM_LIMIT),
    )(x_p, w, x_p)

    # Final RMSNorm: row-wise pass, row-tile scaled down for large H so the
    # (tm_n, H) blocks stay a few MiB even at H = 16K.
    row_cap = max(_SUBLANE_BF16, min(256, (2 * 1024 * 1024) // (2 * H)))
    tm_n = _divisor_tile(m_pad, row_cap, _SUBLANE_BF16)
    n = pl.pallas_call(
        functools.partial(_rmsnorm_kernel, eps=eps),
        out_shape=jax.ShapeDtypeStruct((m_pad, H), out_dtype),
        grid_spec=pltpu.PrefetchScalarGridSpec(
            num_scalar_prefetch=0,
            grid=(m_pad // tm_n,),
            in_specs=[
                pl.BlockSpec((tm_n, H), lambda i: (i, 0)),
                pl.BlockSpec((1, H), lambda i: (0, 0)),           # rmsnorm gain
            ],
            out_specs=pl.BlockSpec((tm_n, H), lambda i: (i, 0)),
        ),
        compiler_params=pltpu.CompilerParams(
            dimension_semantics=("parallel",),
            vmem_limit_bytes=_VMEM_LIMIT),
    )(h, g.reshape(1, H))

    if m_pad != M:
        return h[:M], n[:M]
    return h, n


def _dual_matmul_silu_kernel(xa_ref, xb_ref, wa_ref, wb_ref, o_ref, acc_ref):
    """silu(Xa @ Wa + Xb @ Wb) — concat-free ea_fc with fused activation."""
    @pl.when(pl.program_id(2) == 0)
    def _():
        acc_ref[...] = jnp.zeros_like(acc_ref)

    acc_ref[...] += jnp.dot(xa_ref[...], wa_ref[...],
                            preferred_element_type=jnp.float32)
    acc_ref[...] += jnp.dot(xb_ref[...], wb_ref[...],
                            preferred_element_type=jnp.float32)

    @pl.when(pl.program_id(2) == pl.num_programs(2) - 1)
    def _():
        a = acc_ref[...]
        o_ref[...] = (a * jax.nn.sigmoid(a)).astype(o_ref.dtype)


def pallas_dual_matmul_silu(xa, xb, wa, wb, *, out_dtype=jnp.bfloat16):
    M, K = xa.shape
    assert xb.shape == (M, K)
    K2, N = wa.shape
    assert wa.shape == wb.shape and K == K2 and N % _LANE == 0 and K % _LANE == 0
    m_pad = _round_up(M, _SUBLANE_BF16)
    tm = _divisor_tile(m_pad, 512, _SUBLANE_BF16)
    tn = _divisor_tile(N, 1024, _LANE)
    tk = _divisor_tile(K, 1024, _LANE)
    xa_p = _maybe_pad_rows(xa, m_pad)
    xb_p = _maybe_pad_rows(xb, m_pad)

    out = pl.pallas_call(
        _dual_matmul_silu_kernel,
        out_shape=jax.ShapeDtypeStruct((m_pad, N), out_dtype),
        grid_spec=pltpu.PrefetchScalarGridSpec(
            num_scalar_prefetch=0,
            grid=(m_pad // tm, N // tn, K // tk),
            in_specs=[
                pl.BlockSpec((tm, tk), lambda i, j, k: (i, k)),
                pl.BlockSpec((tm, tk), lambda i, j, k: (i, k)),
                pl.BlockSpec((tk, tn), lambda i, j, k: (k, j)),
                pl.BlockSpec((tk, tn), lambda i, j, k: (k, j)),
            ],
            out_specs=pl.BlockSpec((tm, tn), lambda i, j, k: (i, j)),
            scratch_shapes=[pltpu.VMEM((tm, tn), jnp.float32)],
        ),
        compiler_params=pltpu.CompilerParams(
            dimension_semantics=("parallel", "parallel", "arbitrary"),
            vmem_limit_bytes=_VMEM_LIMIT),
    )(xa_p, xb_p, wa, wb)
    return out if m_pad == M else out[:M]


# ---------------------------------------------------------------------------
# Synthetic CloModel forward (init=True, output_orig=True, greedy sampling)
# ---------------------------------------------------------------------------
def clo_forward(params, input_ids, *, rms_eps=1e-6):
    B, S = input_ids.shape
    # torch.cat((input_ids, token[None, None]), dim=1) in the original implies B == 1
    assert B == 1, "greedy init path of CloModel.forward assumes batch == 1"
    H = params["embed"].shape[1]
    V = params["lm_head"].shape[1]
    M = B * S

    # --- base_model.model: embed -> decoder block -> final RMSNorm ---
    x = params["embed"][input_ids].reshape(M, H)                 # glue: embedding lookup
    h, h_norm = pallas_decoder_block(x, params["w_dec"],
                                     params["final_norm_g"], eps=rms_eps)
    hidden_states_onnorm = h.reshape(B, S, H)                    # pre-norm hidden (2nd return)
    hidden_states = h_norm.reshape(B, S, H)                      # outputs[0]
    del hidden_states                                            # (returned via orig path only)

    # --- orig = base_model.lm_head(outputs[0]) --- (bf16 logits, base-model dtype)
    orig = pallas_matmul(h_norm, params["lm_head"],
                         out_dtype=jnp.bfloat16).reshape(B, S, V)

    # --- init branch, logits_processor is None: greedy token ---
    token = jnp.argmax(orig[:, -1])                              # torch.argmax flattens -> scalar
    token = token[None, None]                                    # (1, 1)

    # --- ea_layer.topK_genrate(hidden_states_onnorm, cat(input_ids, token), lm_head) ---
    # TODO(synk): full tree-structured topK / beam draft generation (tree_buffers) not translated.
    # Draft input tokens are input_ids[:, 1:] ++ token, so rows 0..S-2 of the draft
    # embedding are exactly x rows 1..S-1 -> reuse them; only the new greedy token
    # needs a fresh gather (keeps the bulk of emb_next off the token dependency chain).
    emb_next = jnp.concatenate(
        [x[1:], params["embed"][token[0]].astype(x.dtype)], axis=0)   # (M, H)
    draft_h = pallas_dual_matmul_silu(emb_next, h,
                                      params["w_ea_fc_emb"], params["w_ea_fc_hid"])
    ea_logits = pallas_matmul(draft_h, params["lm_head"],
                              out_dtype=jnp.bfloat16).reshape(B, S, V)

    # mirrors `return (ea_logits, outputs, orig, hidden_states_onnorm, token)`
    return ea_logits, orig, hidden_states_onnorm, token


def init_params(key, *, vocab_size, hidden_size, dtype=jnp.bfloat16):
    k0, k1, k2, k3, k4 = jax.random.split(key, 5)
    scale = 0.02
    f32 = jnp.float32
    return {
        "embed": (scale * jax.random.normal(k0, (vocab_size, hidden_size), f32)).astype(dtype),
        "w_dec": (scale * jax.random.normal(k1, (hidden_size, hidden_size), f32)).astype(dtype),
        "final_norm_g": jnp.ones((hidden_size,), f32),
        "lm_head": (scale * jax.random.normal(k2, (hidden_size, vocab_size), f32)).astype(dtype),
        # split halves of the original (2H, H) ea fc weight (emb-half / hidden-half)
        "w_ea_fc_emb": (scale * jax.random.normal(k3, (hidden_size, hidden_size), f32)).astype(dtype),
        "w_ea_fc_hid": (scale * jax.random.normal(k4, (hidden_size, hidden_size), f32)).astype(dtype),
    }


if __name__ == "__main__":
    VOCAB = 256
    HIDDEN = 128
    BATCH = 1     # greedy init path requires batch == 1 (see assert in clo_forward)
    SEQ = 8

    key = jax.random.PRNGKey(0)
    pkey, ikey = jax.random.split(key)
    params = init_params(pkey, vocab_size=VOCAB, hidden_size=HIDDEN)
    input_ids = jax.random.randint(ikey, (BATCH, SEQ), 0, VOCAB, dtype=jnp.int32)

    fwd = jax.jit(clo_forward)
    ea_logits, orig, hidden_onnorm, token = fwd(params, input_ids)
    jax.block_until_ready((ea_logits, orig, hidden_onnorm, token))

    assert ea_logits.shape == (BATCH, SEQ, VOCAB)
    assert orig.shape == (BATCH, SEQ, VOCAB)
    assert hidden_onnorm.shape == (BATCH, SEQ, HIDDEN)
    assert token.shape == (1, 1)
    assert bool(jnp.all(jnp.isfinite(orig.astype(jnp.float32))))
    assert bool(jnp.all(jnp.isfinite(ea_logits.astype(jnp.float32))))
    print("KERNEL_OK")
</pallas_src>

<mosaic_0001>
module attributes {stable_mosaic.version = 11 : i64} {
  func.func @_matmul_silu_resid_kernel(%arg0: i32, %arg1: i32, %arg2: i32, %arg3: memref<16x128xbf16, #tpu.memory_space<vmem>>, %arg4: memref<128x128xbf16, #tpu.memory_space<vmem>>, %arg5: memref<16x128xbf16, #tpu.memory_space<vmem>>, %arg6: memref<16x128xbf16, #tpu.memory_space<vmem>>, %arg7: memref<16x128xf32, #tpu.memory_space<vmem>>) attributes {dimension_semantics = [#tpu.dimension_semantics<parallel>, #tpu.dimension_semantics<parallel>, #tpu.dimension_semantics<arbitrary>], iteration_bounds = array<i64: 1, 1, 1>, scalar_prefetch = 0 : i64, scratch_operands = 1 : i64, tpu.core_type = #tpu.core_type<tc>, window_params = [{transform_indices = @transform_0, window_bounds = array<i64: 16, 128>}, {transform_indices = @transform_1, window_bounds = array<i64: 128, 128>}, {transform_indices = @transform_2, window_bounds = array<i64: 16, 128>}, {transform_indices = @transform_3, window_bounds = array<i64: 16, 128>}]} {
    %c0_i32 = arith.constant 0 : i32
    %0 = arith.cmpi eq, %arg2, %c0_i32 : i32
    %1 = arith.extui %0 : i1 to i32
    %c0_i32_0 = arith.constant 0 : i32
    %2 = arith.cmpi ne, %1, %c0_i32_0 : i32
    scf.if %2 {
      %cst_10 = arith.constant 0.000000e+00 : f32
      %12 = vector.broadcast %cst_10 : f32 to vector<16x128xf32>
      %c0_11 = arith.constant 0 : index
      %c0_12 = arith.constant 0 : index
      %13 = vector.load %arg7[%c0_11, %c0_12] : memref<16x128xf32, #tpu.memory_space<vmem>>, vector<16x128xf32>
      tpu.vector_store %arg7[%c0_11, %c0_12], %12 {strides = array<i32>} : memref<16x128xf32, #tpu.memory_space<vmem>>, vector<16x128xf32>,
    } else {
    }
    %c0 = arith.constant 0 : index
    %c0_1 = arith.constant 0 : index
    %3 = vector.load %arg7[%c0, %c0_1] : memref<16x128xf32, #tpu.memory_space<vmem>>, vector<16x128xf32>
    %c0_2 = arith.constant 0 : index
    %c0_3 = arith.constant 0 : index
    %4 = vector.load %arg3[%c0_2, %c0_3] : memref<16x128xbf16, #tpu.memory_space<vmem>>, vector<16x128xbf16>
    %c0_4 = arith.constant 0 : index
    %c0_5 = arith.constant 0 : index
    %5 = vector.load %arg4[%c0_4, %c0_5] : memref<128x128xbf16, #tpu.memory_space<vmem>>, vector<128x128xbf16>
    %cst = arith.constant dense<0.000000e+00> : vector<16x128xf32>
    %6 = tpu.matmul %4, %5, %cst {dimension_numbers = #tpu.dot_dimension_numbers<[1], [0], [0], [1], [0, 0, 1, 1], [], []>} : vector<16x128xbf16>, vector<128x128xbf16>, vector<16x128xf32> -> vector<16x128xf32>
    %7 = arith.addf %3, %6 : vector<16x128xf32>
    %c0_6 = arith.constant 0 : index
    %c0_7 = arith.constant 0 : index
    %8 = vector.load %arg7[%c0_6, %c0_7] : memref<16x128xf32, #tpu.memory_space<vmem>>, vector<16x128xf32>
    tpu.vector_store %arg7[%c0_6, %c0_7], %7 {strides = array<i32>} : memref<16x128xf32, #tpu.memory_space<vmem>>, vector<16x128xf32>,
    %c0_i32_8 = arith.constant 0 : i32
    %9 = arith.cmpi eq, %arg2, %c0_i32_8 : i32
    %10 = arith.extui %9 : i1 to i32
    %c0_i32_9 = arith.constant 0 : i32
    %11 = arith.cmpi ne, %10, %c0_i32_9 : i32
    scf.if %11 {
      %c0_10 = arith.constant 0 : index
      %c0_11 = arith.constant 0 : index
      %12 = vector.load %arg7[%c0_10, %c0_11] : memref<16x128xf32, #tpu.memory_space<vmem>>, vector<16x128xf32>
      %c0_12 = arith.constant 0 : index
      %c0_13 = arith.constant 0 : index
      %13 = vector.load %arg5[%c0_12, %c0_13] : memref<16x128xbf16, #tpu.memory_space<vmem>>, vector<16x128xbf16>
      %14 = arith.extf %13 : vector<16x128xbf16> to vector<16x128xf32>
      %15 = arith.negf %12 : vector<16x128xf32>
      %16 = math.exp %15 : vector<16x128xf32>
      %cst_14 = arith.constant 1.000000e+00 : f32
      %17 = vector.broadcast %cst_14 : f32 to vector<16x128xf32>
      %18 = arith.addf %17, %16 : vector<16x128xf32>
      %19 = arith.divf %17, %18 : vector<16x128xf32>
      %20 = arith.mulf %12, %19 : vector<16x128xf32>
      %21 = arith.addf %14, %20 : vector<16x128xf32>
      %22 = arith.truncf %21 : vector<16x128xf32> to vector<16x128xbf16>
      %c0_15 = arith.constant 0 : index
      %c0_16 = arith.constant 0 : index
      %23 = vector.load %arg6[%c0_15, %c0_16] : memref<16x128xbf16, #tpu.memory_space<vmem>>, vector<16x128xbf16>
      tpu.vector_store %arg6[%c0_15, %c0_16], %22 {strides = array<i32>} : memref<16x128xbf16, #tpu.memory_space<vmem>>, vector<16x128xbf16>,
    } else {
    }
    return
  }
  func.func @transform_0(%arg0: i32, %arg1: i32, %arg2: i32) -> (i32, i32) {
    %c0_i32 = arith.constant 0 : i32
    return %arg0, %arg2 : i32, i32
  }
  func.func @transform_1(%arg0: i32, %arg1: i32, %arg2: i32) -> (i32, i32) {
    %c0_i32 = arith.constant 0 : i32
    return %arg2, %arg1 : i32, i32
  }
  func.func @transform_2(%arg0: i32, %arg1: i32, %arg2: i32) -> (i32, i32) {
    %c0_i32 = arith.constant 0 : i32
    return %arg0, %arg1 : i32, i32
  }
  func.func @transform_3(%arg0: i32, %arg1: i32, %arg2: i32) -> (i32, i32) {
    %c0_i32 = arith.constant 0 : i32
    return %arg0, %arg1 : i32, i32
  }
}

module attributes {stable_mosaic.version = 11 : i64} {
  func.func @_rmsnorm_kernel(%arg0: i32, %arg1: memref<16x128xbf16, #tpu.memory_space<vmem>>, %arg2: memref<1x128xf32, #tpu.memory_space<vmem>>, %arg3: memref<16x128xbf16, #tpu.memory_space<vmem>>) attributes {dimension_semantics = [#tpu.dimension_semantics<parallel>], iteration_bounds = array<i64: 1>, scalar_prefetch = 0 : i64, scratch_operands = 0 : i64, tpu.core_type = #tpu.core_type<tc>, window_params = [{transform_indices = @transform_0, window_bounds = array<i64: 16, 128>}, {pipeline_mode = #tpu.pipeline_mode<synchronous>, transform_indices = @transform_1, window_bounds = array<i64: 1, 128>}, {transform_indices = @transform_2, window_bounds = array<i64: 16, 128>}]} {
    %c0 = arith.constant 0 : index
    %c0_0 = arith.constant 0 : index
    %0 = vector.load %arg1[%c0, %c0_0] : memref<16x128xbf16, #tpu.memory_space<vmem>>, vector<16x128xbf16>
    %1 = arith.extf %0 : vector<16x128xbf16> to vector<16x128xf32>
    %2 = arith.mulf %1, %1 : vector<16x128xf32>
    %cst = arith.constant dense<0.000000e+00> : vector<16xf32>
    %3 = vector.multi_reduction <add>, %2, %cst [1] : vector<16x128xf32> to vector<16xf32>
    %4 = vector.shape_cast %3 : vector<16xf32> to vector<16x1xf32>
    %cst_1 = arith.constant 1.280000e+02 : f32
    %5 = vector.broadcast %cst_1 : f32 to vector<16x1xf32>
    %6 = arith.divf %4, %5 : vector<16x1xf32>
    %cst_2 = arith.constant 9.99999997E-7 : f32
    %7 = vector.broadcast %cst_2 : f32 to vector<16x1xf32>
    %8 = arith.addf %6, %7 : vector<16x1xf32>
    %9 = math.rsqrt %8 : vector<16x1xf32>
    %10 = vector.broadcast %9 : vector<16x1xf32> to vector<16x128xf32>
    %11 = arith.mulf %1, %10 : vector<16x128xf32>
    %c0_3 = arith.constant 0 : index
    %c0_4 = arith.constant 0 : index
    %12 = vector.load %arg2[%c0_3, %c0_4] : memref<1x128xf32, #tpu.memory_space<vmem>>, vector<1x128xf32>
    %13 = vector.broadcast %12 : vector<1x128xf32> to vector<16x128xf32>
    %14 = arith.mulf %11, %13 : vector<16x128xf32>
    %15 = arith.truncf %14 : vector<16x128xf32> to vector<16x128xbf16>
    %c0_5 = arith.constant 0 : index
    %c0_6 = arith.constant 0 : index
    %16 = vector.load %arg3[%c0_5, %c0_6] : memref<16x128xbf16, #tpu.memory_space<vmem>>, vector<16x128xbf16>
    tpu.vector_store %arg3[%c0_5, %c0_6], %15 {strides = array<i32>} : memref<16x128xbf16, #tpu.memory_space<vmem>>, vector<16x128xbf16>,
    return
  }
  func.func @transform_0(%arg0: i32) -> (i32, i32) {
    %c0_i32 = arith.constant 0 : i32
    %c0_i32_0 = arith.constant 0 : i32
    return %arg0, %c0_i32 : i32, i32
  }
  func.func @transform_1(%arg0: i32) -> (i32, i32) {
    %c0_i32 = arith.constant 0 : i32
    %c0_i32_0 = arith.constant 0 : i32
    %c0_i32_1 = arith.constant 0 : i32
    return %c0_i32, %c0_i32_0 : i32, i32
  }
  func.func @transform_2(%arg0: i32) -> (i32, i32) {
    %c0_i32 = arith.constant 0 : i32
    %c0_i32_0 = arith.constant 0 : i32
    return %arg0, %c0_i32 : i32, i32
  }
}

module attributes {stable_mosaic.version = 11 : i64} {
  func.func @_matmul_kernel(%arg0: i32, %arg1: i32, %arg2: i32, %arg3: memref<16x128xbf16, #tpu.memory_space<vmem>>, %arg4: memref<128x256xbf16, #tpu.memory_space<vmem>>, %arg5: memref<16x256xbf16, #tpu.memory_space<vmem>>, %arg6: memref<16x256xf32, #tpu.memory_space<vmem>>) attributes {dimension_semantics = [#tpu.dimension_semantics<parallel>, #tpu.dimension_semantics<parallel>, #tpu.dimension_semantics<arbitrary>], iteration_bounds = array<i64: 1, 1, 1>, scalar_prefetch = 0 : i64, scratch_operands = 1 : i64, tpu.core_type = #tpu.core_type<tc>, window_params = [{transform_indices = @transform_0, window_bounds = array<i64: 16, 128>}, {transform_indices = @transform_1, window_bounds = array<i64: 128, 256>}, {transform_indices = @transform_2, window_bounds = array<i64: 16, 256>}]} {
    %c0_i32 = arith.constant 0 : i32
    %0 = arith.cmpi eq, %arg2, %c0_i32 : i32
    %1 = arith.extui %0 : i1 to i32
    %c0_i32_0 = arith.constant 0 : i32
    %2 = arith.cmpi ne, %1, %c0_i32_0 : i32
    scf.if %2 {
      %cst_10 = arith.constant 0.000000e+00 : f32
      %12 = vector.broadcast %cst_10 : f32 to vector<16x256xf32>
      %c0_11 = arith.constant 0 : index
      %c0_12 = arith.constant 0 : index
      %13 = vector.load %arg6[%c0_11, %c0_12] : memref<16x256xf32, #tpu.memory_space<vmem>>, vector<16x256xf32>
      tpu.vector_store %arg6[%c0_11, %c0_12], %12 {strides = array<i32>} : memref<16x256xf32, #tpu.memory_space<vmem>>, vector<16x256xf32>,
    } else {
    }
    %c0 = arith.constant 0 : index
    %c0_1 = arith.constant 0 : index
    %3 = vector.load %arg6[%c0, %c0_1] : memref<16x256xf32, #tpu.memory_space<vmem>>, vector<16x256xf32>
    %c0_2 = arith.constant 0 : index
    %c0_3 = arith.constant 0 : index
    %4 = vector.load %arg3[%c0_2, %c0_3] : memref<16x128xbf16, #tpu.memory_space<vmem>>, vector<16x128xbf16>
    %c0_4 = arith.constant 0 : index
    %c0_5 = arith.constant 0 : index
    %5 = vector.load %arg4[%c0_4, %c0_5] : memref<128x256xbf16, #tpu.memory_space<vmem>>, vector<128x256xbf16>
    %cst = arith.constant dense<0.000000e+00> : vector<16x256xf32>
    %6 = tpu.matmul %4, %5, %cst {dimension_numbers = #tpu.dot_dimension_numbers<[1], [0], [0], [1], [0, 0, 1, 1], [], []>} : vector<16x128xbf16>, vector<128x256xbf16>, vector<16x256xf32> -> vector<16x256xf32>
    %7 = arith.addf %3, %6 : vector<16x256xf32>
    %c0_6 = arith.constant 0 : index
    %c0_7 = arith.constant 0 : index
    %8 = vector.load %arg6[%c0_6, %c0_7] : memref<16x256xf32, #tpu.memory_space<vmem>>, vector<16x256xf32>
    tpu.vector_store %arg6[%c0_6, %c0_7], %7 {strides = array<i32>} : memref<16x256xf32, #tpu.memory_space<vmem>>, vector<16x256xf32>,
    %c0_i32_8 = arith.constant 0 : i32
    %9 = arith.cmpi eq, %arg2, %c0_i32_8 : i32
    %10 = arith.extui %9 : i1 to i32
    %c0_i32_9 = arith.constant 0 : i32
    %11 = arith.cmpi ne, %10, %c0_i32_9 : i32
    scf.if %11 {
      %c0_10 = arith.constant 0 : index
      %c0_11 = arith.constant 0 : index
      %12 = vector.load %arg6[%c0_10, %c0_11] : memref<16x256xf32, #tpu.memory_space<vmem>>, vector<16x256xf32>
      %13 = arith.truncf %12 : vector<16x256xf32> to vector<16x256xbf16>
      %c0_12 = arith.constant 0 : index
      %c0_13 = arith.constant 0 : index
      %14 = vector.load %arg5[%c0_12, %c0_13] : memref<16x256xbf16, #tpu.memory_space<vmem>>, vector<16x256xbf16>
      tpu.vector_store %arg5[%c0_12, %c0_13], %13 {strides = array<i32>} : memref<16x256xbf16, #tpu.memory_space<vmem>>, vector<16x256xbf16>,
    } else {
    }
    return
  }
  func.func @transform_0(%arg0: i32, %arg1: i32, %arg2: i32) -> (i32, i32) {
    %c0_i32 = arith.constant 0 : i32
    return %arg0, %arg2 : i32, i32
  }
  func.func @transform_1(%arg0: i32, %arg1: i32, %arg2: i32) -> (i32, i32) {
    %c0_i32 = arith.constant 0 : i32
    return %arg2, %arg1 : i32, i32
  }
  func.func @transform_2(%arg0: i32, %arg1: i32, %arg2: i32) -> (i32, i32) {
    %c0_i32 = arith.constant 0 : i32
    return %arg0, %arg1 : i32, i32
  }
}

module attributes {stable_mosaic.version = 11 : i64} {
  func.func @_dual_matmul_silu_kernel(%arg0: i32, %arg1: i32, %arg2: i32, %arg3: memref<16x128xbf16, #tpu.memory_space<vmem>>, %arg4: memref<16x128xbf16, #tpu.memory_space<vmem>>, %arg5: memref<128x128xbf16, #tpu.memory_space<vmem>>, %arg6: memref<128x128xbf16, #tpu.memory_space<vmem>>, %arg7: memref<16x128xbf16, #tpu.memory_space<vmem>>, %arg8: memref<16x128xf32, #tpu.memory_space<vmem>>) attributes {dimension_semantics = [#tpu.dimension_semantics<parallel>, #tpu.dimension_semantics<parallel>, #tpu.dimension_semantics<arbitrary>], iteration_bounds = array<i64: 1, 1, 1>, scalar_prefetch = 0 : i64, scratch_operands = 1 : i64, tpu.core_type = #tpu.core_type<tc>, window_params = [{transform_indices = @transform_0, window_bounds = array<i64: 16, 128>}, {transform_indices = @transform_1, window_bounds = array<i64: 16, 128>}, {transform_indices = @transform_2, window_bounds = array<i64: 128, 128>}, {transform_indices = @transform_3, window_bounds = array<i64: 128, 128>}, {transform_indices = @transform_4, window_bounds = array<i64: 16, 128>}]} {
    %c0_i32 = arith.constant 0 : i32
    %0 = arith.cmpi eq, %arg2, %c0_i32 : i32
    %1 = arith.extui %0 : i1 to i32
    %c0_i32_0 = arith.constant 0 : i32
    %2 = arith.cmpi ne, %1, %c0_i32_0 : i32
    scf.if %2 {
      %cst_19 = arith.constant 0.000000e+00 : f32
      %18 = vector.broadcast %cst_19 : f32 to vector<16x128xf32>
      %c0_20 = arith.constant 0 : index
      %c0_21 = arith.constant 0 : index
      %19 = vector.load %arg8[%c0_20, %c0_21] : memref<16x128xf32, #tpu.memory_space<vmem>>, vector<16x128xf32>
      tpu.vector_store %arg8[%c0_20, %c0_21], %18 {strides = array<i32>} : memref<16x128xf32, #tpu.memory_space<vmem>>, vector<16x128xf32>,
    } else {
    }
    %c0 = arith.constant 0 : index
    %c0_1 = arith.constant 0 : index
    %3 = vector.load %arg8[%c0, %c0_1] : memref<16x128xf32, #tpu.memory_space<vmem>>, vector<16x128xf32>
    %c0_2 = arith.constant 0 : index
    %c0_3 = arith.constant 0 : index
    %4 = vector.load %arg3[%c0_2, %c0_3] : memref<16x128xbf16, #tpu.memory_space<vmem>>, vector<16x128xbf16>
    %c0_4 = arith.constant 0 : index
    %c0_5 = arith.constant 0 : index
    %5 = vector.load %arg5[%c0_4, %c0_5] : memref<128x128xbf16, #tpu.memory_space<vmem>>, vector<128x128xbf16>
    %cst = arith.constant dense<0.000000e+00> : vector<16x128xf32>
    %6 = tpu.matmul %4, %5, %cst {dimension_numbers = #tpu.dot_dimension_numbers<[1], [0], [0], [1], [0, 0, 1, 1], [], []>} : vector<16x128xbf16>, vector<128x128xbf16>, vector<16x128xf32> -> vector<16x128xf32>
    %7 = arith.addf %3, %6 : vector<16x128xf32>
    %c0_6 = arith.constant 0 : index
    %c0_7 = arith.constant 0 : index
    %8 = vector.load %arg8[%c0_6, %c0_7] : memref<16x128xf32, #tpu.memory_space<vmem>>, vector<16x128xf32>
    tpu.vector_store %arg8[%c0_6, %c0_7], %7 {strides = array<i32>} : memref<16x128xf32, #tpu.memory_space<vmem>>, vector<16x128xf32>,
    %c0_8 = arith.constant 0 : index
    %c0_9 = arith.constant 0 : index
    %9 = vector.load %arg8[%c0_8, %c0_9] : memref<16x128xf32, #tpu.memory_space<vmem>>, vector<16x128xf32>
    %c0_10 = arith.constant 0 : index
    %c0_11 = arith.constant 0 : index
    %10 = vector.load %arg4[%c0_10, %c0_11] : memref<16x128xbf16, #tpu.memory_space<vmem>>, vector<16x128xbf16>
    %c0_12 = arith.constant 0 : index
    %c0_13 = arith.constant 0 : index
    %11 = vector.load %arg6[%c0_12, %c0_13] : memref<128x128xbf16, #tpu.memory_space<vmem>>, vector<128x128xbf16>
    %cst_14 = arith.constant dense<0.000000e+00> : vector<16x128xf32>
    %12 = tpu.matmul %10, %11, %cst_14 {dimension_numbers = #tpu.dot_dimension_numbers<[1], [0], [0], [1], [0, 0, 1, 1], [], []>} : vector<16x128xbf16>, vector<128x128xbf16>, vector<16x128xf32> -> vector<16x128xf32>
    %13 = arith.addf %9, %12 : vector<16x128xf32>
    %c0_15 = arith.constant 0 : index
    %c0_16 = arith.constant 0 : index
    %14 = vector.load %arg8[%c0_15, %c0_16] : memref<16x128xf32, #tpu.memory_space<vmem>>, vector<16x128xf32>
    tpu.vector_store %arg8[%c0_15, %c0_16], %13 {strides = array<i32>} : memref<16x128xf32, #tpu.memory_space<vmem>>, vector<16x128xf32>,
    %c0_i32_17 = arith.constant 0 : i32
    %15 = arith.cmpi eq, %arg2, %c0_i32_17 : i32
    %16 = arith.extui %15 : i1 to i32
    %c0_i32_18 = arith.constant 0 : i32
    %17 = arith.cmpi ne, %16, %c0_i32_18 : i32
    scf.if %17 {
      %c0_19 = arith.constant 0 : index
      %c0_20 = arith.constant 0 : index
      %18 = vector.load %arg8[%c0_19, %c0_20] : memref<16x128xf32, #tpu.memory_space<vmem>>, vector<16x128xf32>
      %19 = arith.negf %18 : vector<16x128xf32>
      %20 = math.exp %19 : vector<16x128xf32>
      %cst_21 = arith.constant 1.000000e+00 : f32
      %21 = vector.broadcast %cst_21 : f32 to vector<16x128xf32>
      %22 = arith.addf %21, %20 : vector<16x128xf32>
      %23 = arith.divf %21, %22 : vector<16x128xf32>
      %24 = arith.mulf %18, %23 : vector<16x128xf32>
      %25 = arith.truncf %24 : vector<16x128xf32> to vector<16x128xbf16>
      %c0_22 = arith.constant 0 : index
      %c0_23 = arith.constant 0 : index
      %26 = vector.load %arg7[%c0_22, %c0_23] : memref<16x128xbf16, #tpu.memory_space<vmem>>, vector<16x128xbf16>
      tpu.vector_store %arg7[%c0_22, %c0_23], %25 {strides = array<i32>} : memref<16x128xbf16, #tpu.memory_space<vmem>>, vector<16x128xbf16>,
    } else {
    }
    return
  }
  func.func @transform_0(%arg0: i32, %arg1: i32, %arg2: i32) -> (i32, i32) {
    %c0_i32 = arith.constant 0 : i32
    return %arg0, %arg2 : i32, i32
  }
  func.func @transform_1(%arg0: i32, %arg1: i32, %arg2: i32) -> (i32, i32) {
    %c0_i32 = arith.constant 0 : i32
    return %arg0, %arg2 : i32, i32
  }
  func.func @transform_2(%arg0: i32, %arg1: i32, %arg2: i32) -> (i32, i32) {
    %c0_i32 = arith.constant 0 : i32
    return %arg2, %arg1 : i32, i32
  }
  func.func @transform_3(%arg0: i32, %arg1: i32, %arg2: i32) -> (i32, i32) {
    %c0_i32 = arith.constant 0 : i32
    return %arg2, %arg1 : i32, i32
  }
  func.func @transform_4(%arg0: i32, %arg1: i32, %arg2: i32) -> (i32, i32) {
    %c0_i32 = arith.constant 0 : i32
    return %arg0, %arg1 : i32, i32
  }
}

</mosaic_0001>

<bundles_post_ra>
// kernel: clo_forward.6
= control target key start
LH: loop header
LB: loop body
LE: loop exit
PB: predicated region body
PF: predicated region fallthrough
CT: control target
= control target key end

     0   :  { %v85_v5 = vmov 128.0   ;;  %s110_s0 = inlined_call_operand.vmem [shape: bf16[16,128], index: 0, kind: input, shape index: {}]   ;;  %s111_s1 = inlined_call_operand.vmem [shape: f32[1,128], index: 1, kind: input, shape index: {}]   ;;  %s112_s2 = inlined_call_operand.vmem [shape: bf16[16,128], index: 2, kind: output, shape index: {}]  }
   0x1   :  { %v69_v0 = vld [vmem:[%s110_s0] sm:$0xff]   ;;  %79 = vrcp.f32 %v85_v5 }
   0x2   :  { %v70_v1 = vunpack.c.l.bf16 %v69_v0  ;;  %v71_v3 = vunpack.c.h.bf16 %v69_v0  ;;  %v78_v31 = vld [vmem:[%s111_s1] ss:$0 sm:$0xff] }
   0x4   :  { %v15_v2 = vmul.f32 %v70_v1, %v70_v1  ;;  %v16_v4 = vmul.f32 %v71_v3, %v71_v3 }
   0x6   :  { %17 = vadd.xlane.f32.xlu0 %v15_v2 }
   0x7   :  { %v80_v6 = vpop.eup %79 }
   0x8   :  { %v22_v7 = vmul.f32 128.0, %v80_v6  ;;  %vm26_vm0 = vweird.f32 %v80_v6 }
   0xa   :  { %v23_v8 = vsub.f32 1.0, %v22_v7 }
   0xc   :  { %v24_v9 = vmul.f32 %v80_v6, %v23_v8 }
   0xe   :  { %19 = vadd.xlane.f32.xlu0 %v16_v4  ;;  %v25_v10 = vadd.f32 %v80_v6, %v24_v9 }
  0x10   :  { %v27_v11 = vsel %vm26_vm0, %v80_v6, %v25_v10 }
  0x79   :  { %v18_v12 = vpop.xlane.xlu0 %17 }
  0x7a   :  { %v28_v13 = vmul.f32 %v27_v11, %v18_v12 }
  0x7c   :  { %v30_v14 = vadd.f32 1e-06, %v28_v13 }
  0x7e   :  { %81 = vrsqrt.f32 %v30_v14  ;;  %vm38_vm2 = vweird.f32 %v30_v14 }
  0x81   :  { %v20_v15 = vpop.xlane.xlu0 %19 }
  0x82   :  { %v29_v16 = vmul.f32 %v27_v11, %v20_v15 }
  0x84   :  { %v82_v17 = vpop.eup %81  ;;  %v31_v18 = vadd.f32 1e-06, %v29_v16 }
  0x85   :  { %v33_v19 = vmul.f32 %v82_v17, %v30_v14  ;;  %vm39_vm1 = vweird.f32 %v82_v17 }
  0x86   :  { %83 = vrsqrt.f32 %v31_v18  ;;  %vm40_vm3 = vmor %vm38_vm2, %vm39_vm1  ;;  %vm48_vm5 = vweird.f32 %v31_v18 }
  0x87   :  { %v34_v20 = vmul.f32 %v82_v17, %v33_v19 }
  0x89   :  { %v35_v21 = vmul.f32 0.5, %v34_v20 }
  0x8b   :  { %v36_v22 = vsub.f32 1.5, %v35_v21 }
  0x8c   :  { %v84_v23 = vpop.eup %83 }
  0x8d   :  { %v43_v24 = vmul.f32 %v84_v23, %v31_v18  ;;  %v37_v25 = vmul.f32 %v82_v17, %v36_v22  ;;  %vm49_vm4 = vweird.f32 %v84_v23 }
  0x8e   :  { %vm50_vm6 = vmor %vm48_vm5, %vm49_vm4 }
  0x8f   :  { %v44_v26 = vmul.f32 %v84_v23, %v43_v24  ;;  %v41_v28 = vsel %vm40_vm3, %v82_v17, %v37_v25 }
  0x90   :  { %v52_v32 = vmul.f32 %v70_v1, %v41_v28 }
  0x91   :  { %v45_v27 = vmul.f32 0.5, %v44_v26 }
  0x92   :  { %v58_v35 = vmul.f32 %v78_v31, %v52_v32 }
  0x93   :  { %v46_v29 = vsub.f32 1.5, %v45_v27 }
  0x95   :  { %v47_v30 = vmul.f32 %v84_v23, %v46_v29 }
  0x97   :  { %v51_v33 = vsel %vm50_vm6, %v84_v23, %v47_v30 }
  0x98   :  { %v53_v34 = vmul.f32 %v71_v3, %v51_v33 }
  0x9a   :  { %v59_v36 = vmul.f32 %v78_v31, %v53_v34 }
  0x9c   :  { %v75_v37 = vpack.c.bf16 %v59_v36, %v58_v35 }
  0x9e   :  { %76 = vst [vmem:[%s112_s2] sm:$0xff] %v75_v37  }

// kernel: clo_forward.5
= control target key start
LH: loop header
LB: loop body
LE: loop exit
PB: predicated region body
PF: predicated region fallthrough
CT: control target
= control target key end

     0   :  { %s288_s1 = inlined_call_operand.vmem [shape: bf16[128,128], index: 1, kind: input, shape index: {}]   ;;  %s289_s0 = inlined_call_operand.vmem [shape: bf16[16,128], index: 0, kind: input, shape index: {}, may-alias: {0,2}]   ;;  %s290_s2 = inlined_call_operand.vmem [shape: bf16[16,128], index: 2, kind: input, shape index: {}, may-alias: {0,2}]   ;;  %s291_s3 = inlined_call_operand.vmem [shape: bf16[16,128], index: 3, kind: output, shape index: {}]  }
   0x1   :  { %v217_v0 = vld [vmem:[%s288_s1 + $0x38] sm:$0xff]  ;;  %v216_v1 = vld [vmem:[%s288_s1 + $0x30] sm:$0xff]  ;;  %v215_v2 = vld [vmem:[%s288_s1 + $0x28] sm:$0xff] }
   0x2   :  { %94 = vmatpush.bf16.msra.mxu0 %v217_v0  ;;  %v214_v3 = vld [vmem:[%s288_s1 + $0x20] sm:$0xff]  ;;  %v213_v4 = vld [vmem:[%s288_s1 + $0x18] sm:$0xff]  ;;  %v212_v5 = vld [vmem:[%s288_s1 + $0x10] sm:$0xff] }
   0x3   :  { %v211_v6 = vld [vmem:[%s288_s1 + $0x8] sm:$0xff]  ;;  %v210_v7 = vld [vmem:[%s288_s1] sm:$0xff] }
   0x4   :  { %v209_v8 = vld [vmem:[%s289_s0] sm:$0xff] }
   0x5   :  { %v219_v30 = vld [vmem:[%s290_s2] sm:$0xff]  }
   0x6   :  { %95 = vmatpush.bf16.msra.mxu0 %v216_v1  ;;  %v220_v35 = vunpack.c.l.bf16 %v219_v30  ;;  %v221_v38 = vunpack.c.h.bf16 %v219_v30 }
   0xa   :  { %96 = vmatpush.bf16.msra.mxu0 %v215_v2 }
   0xe   :  { %97 = vmatpush.bf16.msra.mxu0 %v214_v3 }
  0x12   :  { %98 = vmatpush.bf16.msra.mxu0 %v213_v4 }
  0x16   :  { %99 = vmatpush.bf16.msra.mxu0 %v212_v5 }
  0x1a   :  { %100 = vmatpush.bf16.msra.mxu0 %v211_v6 }
  0x1e   :  { %101 = vmatpush.bf16.msra.mxu0 %v210_v7 }
  0x21   :  { %102 = vmatmul.bf16.vlgmr.msra.gmra.mxu0 %v209_v8 }
  0x9e   :  { %v103_v9 = vpop.f32.mrf.mxu0 }
  0x9f   :  { %v207_v10 = vmul.f32 -1.442695, %v103_v9 }
  0xa1   :  { %227 = vpow2.f32 %v207_v10 }
  0xa6   :  { %v105_v11 = vpop.f32.mrf.mxu0 }
  0xa7   :  { %v228_v12 = vpop.eup %227  ;;  %v208_v13 = vmul.f32 -1.442695, %v105_v11 }
  0xa8   :  { %v127_v14 = vadd.f32 1.0, %v228_v12 }
  0xa9   :  { %229 = vpow2.f32 %v208_v13 }
  0xaa   :  { %231 = vrcp.f32 %v127_v14  ;;  %v140_v23 = vand.u32 2147483648, %v127_v14  ;;  %vm134_vm1 = vweird.f32 %v127_v14  ;;  %v138_v24 = vand.u32 2147483647, %v127_v14 }
  0xac   :  { %v141_v28 = vor.u32 1.1754944e-38, %v140_v23  ;;  %vm139_vm3 = vcmp.eq.f32.partialorder %v138_v24, 8.507059e+37 }
  0xaf   :  { %v230_v15 = vpop.eup %229 }
  0xb0   :  { %v232_v16 = vpop.eup %231  ;;  %v128_v17 = vadd.f32 1.0, %v230_v15 }
  0xb1   :  { %v130_v18 = vmul.f32 %v232_v16, %v127_v14  ;;  %vm135_vm0 = vweird.f32 %v232_v16 }
  0xb2   :  { %233 = vrcp.f32 %v128_v17  ;;  %vm136_vm2 = vmor %vm134_vm1, %vm135_vm0  ;;  %v155_v29 = vand.u32 2147483648, %v128_v17  ;;  %v153_v32 = vand.u32 2147483647, %v128_v17  ;;  %vm149_vm5 = vweird.f32 %v128_v17 }
  0xb3   :  { %v131_v19 = vsub.f32 1.0, %v130_v18 }
  0xb4   :  { %v156_v36 = vor.u32 1.1754944e-38, %v155_v29  ;;  %vm154_vm7 = vcmp.eq.f32.partialorder %v153_v32, 8.507059e+37 }
  0xb5   :  { %v132_v20 = vmul.f32 %v232_v16, %v131_v19 }
  0xb7   :  { %v133_v21 = vadd.f32 %v232_v16, %v132_v20 }
  0xb8   :  { %v234_v22 = vpop.eup %233 }
  0xb9   :  { %v145_v25 = vmul.f32 %v234_v22, %v128_v17  ;;  %v137_v26 = vsel %vm136_vm2, %v232_v16, %v133_v21  ;;  %vm150_vm4 = vweird.f32 %v234_v22 }
  0xba   :  { %v142_v33 = vsel %vm139_vm3, %v141_v28, %v137_v26  ;;  %vm151_vm6 = vmor %vm149_vm5, %vm150_vm4 }
  0xbb   :  { %v146_v27 = vsub.f32 1.0, %v145_v25  ;;  %v159_v37 = vmul.f32 %v142_v33, %v103_v9 }
  0xbd   :  { %v147_v31 = vmul.f32 %v234_v22, %v146_v27  ;;  %v161_v42 = vadd.f32 %v220_v35, %v159_v37 }
  0xbf   :  { %v148_v34 = vadd.f32 %v234_v22, %v147_v31 }
  0xc1   :  { %v152_v39 = vsel %vm151_vm6, %v234_v22, %v148_v34 }
  0xc2   :  { %v157_v40 = vsel %vm154_vm7, %v156_v36, %v152_v39 }
  0xc3   :  { %v160_v41 = vmul.f32 %v157_v40, %v105_v11 }
  0xc5   :  { %v162_v43 = vadd.f32 %v221_v38, %v160_v41 }
  0xc7   :  { %v225_v44 = vpack.c.bf16 %v162_v43, %v161_v42 }
  0xc9   :  { %226 = vst [vmem:[%s291_s3] sm:$0xff] %v225_v44  }

// kernel: clo_forward.7
= control target key start
LH: loop header
LB: loop body
LE: loop exit
PB: predicated region body
PF: predicated region fallthrough
CT: control target
= control target key end

     0   :  { %7 = vsyncpa [#allocation4], 0  ;;  %s309_s12 = smov [#allocation3]   ;;  %s310_s14 = smov 128   ;;  %s339_s0 = inlined_call_operand.vmem [shape: bf16[16,128], index: 0, kind: input, shape index: {}]   ;;  %s340_s1 = inlined_call_operand.hbm [shape: bf16[128,256], index: 1, kind: input, shape index: {}]   ;;  %s341_s2 = inlined_call_operand.vmem [shape: bf16[16,256], index: 2, kind: output, shape index: {}]  }
   0x1   :  { %s14_s11 = sshll.u32 %s340_s1, 4  ;;  %s16_s13 = sshll.u32 %s309_s12, 4  ;;  %s15_s11 = int_to_ptr.hbm [resolvable:$true] %s14_s11  ;;  %s17_s13 = int_to_ptr.vmem [resolvable:$true] %s16_s13 }
   0x2   :  { %s311_s15 = smov 8  }
   0x3   :  { %22 = dma.hbm_to_vmem [thread:$0]  %s15_s11, 2048, %s17_s13, [#allocation4], %s310_s14, %s310_s14, %s311_s15  }
   0x4   :  { %307 = dma.done.wait [#allocation4], 2048  }
   0x5   :  { %308 = vsyncadd [#allocation4], 4294965248  ;;  %v257_v0 = vld [vmem:[#allocation3 + $0x70] sm:$0xf]  ;;  %v279_v1 = vld [vmem:[#allocation3 + $0x74] sm:$0xf0] }
   0x6   :  { %v278_v2 = vld [vmem:[#allocation3 + $0x74] sm:$0xf]  ;;  %v258_v3 = vor.u32 %v279_v1, %v257_v0  ;;  %v259_v4 = vld [vmem:[#allocation3 + $0x78] sm:$0xf0]  ;;  %v249_v5 = vld [vmem:[#allocation3 + $0x60] sm:$0xf] }
   0x7   :  { %v277_v6 = vld [vmem:[#allocation3 + $0x64] sm:$0xf0]  ;;  %v262_v7 = vor.u32 %v278_v2, %v259_v4  ;;  %v276_v8 = vld [vmem:[#allocation3 + $0x64] sm:$0xf]  ;;  %v251_v9 = vld [vmem:[#allocation3 + $0x68] sm:$0xf0] }
   0x8   :  { %143 = vmatpush.bf16.msra.mxu0 %v258_v3  ;;  %v250_v10 = vor.u32 %v277_v6, %v249_v5  ;;  %v254_v11 = vor.u32 %v276_v8, %v251_v9  ;;  %v241_v12 = vld [vmem:[#allocation3 + $0x50] sm:$0xf]  ;;  %v275_v13 = vld [vmem:[#allocation3 + $0x54] sm:$0xf0]  ;;  %v274_v14 = vld [vmem:[#allocation3 + $0x54] sm:$0xf] }
   0x9   :  { %157 = vmatpush.bf16.msra.mxu1 %v262_v7  ;;  %v243_v15 = vld [vmem:[#allocation3 + $0x58] sm:$0xf0]  ;;  %v242_v16 = vor.u32 %v275_v13, %v241_v12  ;;  %v233_v18 = vld [vmem:[#allocation3 + $0x40] sm:$0xf]  ;;  %v273_v19 = vld [vmem:[#allocation3 + $0x44] sm:$0xf0] }
   0xa   :  { %v246_v17 = vor.u32 %v274_v14, %v243_v15  ;;  %v272_v20 = vld [vmem:[#allocation3 + $0x44] sm:$0xf]  ;;  %v235_v21 = vld [vmem:[#allocation3 + $0x48] sm:$0xf0]  ;;  %v234_v22 = vor.u32 %v273_v19, %v233_v18  ;;  %v225_v24 = vld [vmem:[#allocation3 + $0x30] sm:$0xf] }
   0xb   :  { %v238_v23 = vor.u32 %v272_v20, %v235_v21  ;;  %v271_v25 = vld [vmem:[#allocation3 + $0x34] sm:$0xf0]  ;;  %v270_v26 = vld [vmem:[#allocation3 + $0x34] sm:$0xf]  ;;  %v227_v27 = vld [vmem:[#allocation3 + $0x38] sm:$0xf0] }
   0xc   :  { %144 = vmatpush.bf16.msra.mxu0 %v250_v10  ;;  %v226_v28 = vor.u32 %v271_v25, %v225_v24  ;;  %v230_v29 = vor.u32 %v270_v26, %v227_v27  ;;  %v217_v30 = vld [vmem:[#allocation3 + $0x20] sm:$0xf]  ;;  %v269_v31 = vld [vmem:[#allocation3 + $0x24] sm:$0xf0]  ;;  %v268_v32 = vld [vmem:[#allocation3 + $0x24] sm:$0xf] }
   0xd   :  { %158 = vmatpush.bf16.msra.mxu1 %v254_v11  ;;  %v219_v33 = vld [vmem:[#allocation3 + $0x28] sm:$0xf0]  ;;  %v218_v34 = vor.u32 %v269_v31, %v217_v30  ;;  %v209_v36 = vld [vmem:[#allocation3 + $0x10] sm:$0xf]  ;;  %v267_v37 = vld [vmem:[#allocation3 + $0x14] sm:$0xf0] }
   0xe   :  { %v222_v35 = vor.u32 %v268_v32, %v219_v33  ;;  %v266_v38 = vld [vmem:[#allocation3 + $0x14] sm:$0xf]  ;;  %v211_v39 = vld [vmem:[#allocation3 + $0x18] sm:$0xf0]  ;;  %v210_v40 = vor.u32 %v267_v37, %v209_v36  ;;  %v201_v42 = vld [vmem:[#allocation3] sm:$0xf] }
   0xf   :  { %v214_v41 = vor.u32 %v266_v38, %v211_v39  ;;  %v265_v43 = vld [vmem:[#allocation3 + $0x4] sm:$0xf0]  ;;  %v264_v44 = vld [vmem:[#allocation3 + $0x4] sm:$0xf]  ;;  %v203_v45 = vld [vmem:[#allocation3 + $0x8] sm:$0xf0] }
  0x10   :  { %145 = vmatpush.bf16.msra.mxu0 %v242_v16  ;;  %v202_v46 = vor.u32 %v265_v43, %v201_v42  ;;  %v206_v47 = vor.u32 %v264_v44, %v203_v45  ;;  %v263_v48 = vld [vmem:[%s339_s0] sm:$0xff] }
  0x11   :  { %159 = vmatpush.bf16.msra.mxu1 %v246_v17 }
  0x14   :  { %146 = vmatpush.bf16.msra.mxu0 %v234_v22 }
  0x15   :  { %160 = vmatpush.bf16.msra.mxu1 %v238_v23 }
  0x18   :  { %147 = vmatpush.bf16.msra.mxu0 %v226_v28 }
  0x19   :  { %161 = vmatpush.bf16.msra.mxu1 %v230_v29 }
  0x1c   :  { %148 = vmatpush.bf16.msra.mxu0 %v218_v34 }
  0x1d   :  { %162 = vmatpush.bf16.msra.mxu1 %v222_v35 }
  0x20   :  { %149 = vmatpush.bf16.msra.mxu0 %v210_v40 }
  0x21   :  { %163 = vmatpush.bf16.msra.mxu1 %v214_v41 }
  0x24   :  { %150 = vmatpush.bf16.msra.mxu0 %v202_v46 }
  0x25   :  { %164 = vmatpush.bf16.msra.mxu1 %v206_v47 }
  0x27   :  { %151 = vmatmul.bf16.vlgmr.msra.gmra.mxu0 %v263_v48 }
  0x28   :  { %165 = vmatmul.bf16.vlgmr.msra.gmra.mxu1 %v263_v48 }
  0xa4   :  { %v152_v49 = vpop.f32.mrf.mxu0 }
  0xa5   :  { %v166_v50 = vpop.f32.mrf.mxu1 }
  0xa6   :  { %v186_v51 = vpack.c.bf16 %v166_v50, %v152_v49 }
  0xa8   :  { %188 = vst [vmem:[%s341_s2] sm:$0xff] %v186_v51 }
  0xac   :  { %v154_v52 = vpop.f32.mrf.mxu0 }
  0xad   :  { %v168_v53 = vpop.f32.mrf.mxu1 }
  0xae   :  { %v187_v54 = vpack.c.bf16 %v168_v53, %v154_v52 }
  0xb0   :  { %189 = vst [vmem:[%s341_s2 + $0x8] sm:$0xff] %v187_v54 }
  0xb1   :  { %194 = vsyncpa [#allocation4], 1 }

// kernel: clo_forward.8
= control target key start
LH: loop header
LB: loop body
LE: loop exit
PB: predicated region body
PF: predicated region fallthrough
CT: control target
= control target key end

     0   :  { %9 = vsyncpa [#allocation4], 0  ;;  %s411_s18 = smov [#allocation3]   ;;  %s412_s20 = smov 64   ;;  %s475_s0 = inlined_call_operand.vmem [shape: bf16[16,128], index: 0, kind: input, shape index: {}]   ;;  %s476_s1 = inlined_call_operand.vmem [shape: bf16[16,128], index: 1, kind: input, shape index: {}]   ;;  %s477_s2 = inlined_call_operand.vmem [shape: bf16[128,128], index: 2, kind: input, shape index: {}]   ;;  %s478_s3 = inlined_call_operand.hbm [shape: bf16[128,128], index: 3, kind: input, shape index: {}]   ;;  %s479_s4 = inlined_call_operand.vmem [shape: bf16[16,128], index: 4, kind: output, shape index: {}]  }
   0x1   :  { %s20_s17 = sshll.u32 %s478_s3, 4  ;;  %s22_s19 = sshll.u32 %s411_s18, 4  ;;  %s21_s17 = int_to_ptr.hbm [resolvable:$true] %s20_s17  ;;  %s23_s19 = int_to_ptr.vmem [resolvable:$true] %s22_s19 }
   0x2   :  { %s413_s21 = smov 4  }
   0x3   :  { %28 = dma.hbm_to_vmem [thread:$0]  %s21_s17, 1024, %s23_s19, [#allocation4], %s412_s20, %s412_s20, %s413_s21  }
   0x4   :  { %409 = dma.done.wait [#allocation4], 1024  }
   0x5   :  { %410 = vsyncadd [#allocation4], 4294966272  ;;  %v359_v0 = vld [vmem:[%s477_s2 + $0x38] sm:$0xff]  ;;  %v358_v2 = vld [vmem:[%s477_s2 + $0x30] sm:$0xff] }
   0x6   :  { %v368_v1 = vld [vmem:[#allocation3 + $0x38] sm:$0xff]  ;;  %113 = vmatpush.bf16.msra.mxu0 %v359_v0  ;;  %v367_v3 = vld [vmem:[#allocation3 + $0x30] sm:$0xff]  ;;  %v357_v4 = vld [vmem:[%s477_s2 + $0x28] sm:$0xff] }
   0x7   :  { %205 = vmatpush.bf16.msra.mxu1 %v368_v1  ;;  %v366_v5 = vld [vmem:[#allocation3 + $0x28] sm:$0xff]  ;;  %v356_v6 = vld [vmem:[%s477_s2 + $0x20] sm:$0xff]  ;;  %v355_v8 = vld [vmem:[%s477_s2 + $0x18] sm:$0xff] }
   0x8   :  { %v365_v7 = vld [vmem:[#allocation3 + $0x20] sm:$0xff]  ;;  %v364_v9 = vld [vmem:[#allocation3 + $0x18] sm:$0xff]  ;;  %v354_v10 = vld [vmem:[%s477_s2 + $0x10] sm:$0xff] }
   0x9   :  { %v363_v11 = vld [vmem:[#allocation3 + $0x10] sm:$0xff]  ;;  %v353_v12 = vld [vmem:[%s477_s2 + $0x8] sm:$0xff]  ;;  %v352_v14 = vld [vmem:[%s477_s2] sm:$0xff] }
   0xa   :  { %114 = vmatpush.bf16.msra.mxu0 %v358_v2  ;;  %v362_v13 = vld [vmem:[#allocation3 + $0x8] sm:$0xff]  ;;  %v361_v15 = vld [vmem:[#allocation3] sm:$0xff] }
   0xb   :  { %206 = vmatpush.bf16.msra.mxu1 %v367_v3  ;;  %v351_v16 = vld [vmem:[%s475_s0] sm:$0xff] }
   0xc   :  { %v360_v17 = vld [vmem:[%s476_s1] sm:$0xff] }
   0xe   :  { %115 = vmatpush.bf16.msra.mxu0 %v357_v4 }
   0xf   :  { %207 = vmatpush.bf16.msra.mxu1 %v366_v5 }
  0x12   :  { %116 = vmatpush.bf16.msra.mxu0 %v356_v6 }
  0x13   :  { %208 = vmatpush.bf16.msra.mxu1 %v365_v7 }
  0x16   :  { %117 = vmatpush.bf16.msra.mxu0 %v355_v8 }
  0x17   :  { %209 = vmatpush.bf16.msra.mxu1 %v364_v9 }
  0x1a   :  { %118 = vmatpush.bf16.msra.mxu0 %v354_v10 }
  0x1b   :  { %210 = vmatpush.bf16.msra.mxu1 %v363_v11 }
  0x1e   :  { %119 = vmatpush.bf16.msra.mxu0 %v353_v12 }
  0x1f   :  { %211 = vmatpush.bf16.msra.mxu1 %v362_v13 }
  0x22   :  { %120 = vmatpush.bf16.msra.mxu0 %v352_v14 }
  0x23   :  { %212 = vmatpush.bf16.msra.mxu1 %v361_v15 }
  0x25   :  { %121 = vmatmul.bf16.vlgmr.msra.gmra.mxu0 %v351_v16 }
  0x26   :  { %213 = vmatmul.bf16.vlgmr.msra.gmra.mxu1 %v360_v17 }
  0xa2   :  { %v122_v18 = vpop.f32.mrf.mxu0 }
  0xa3   :  { %v214_v19 = vpop.f32.mrf.mxu1 }
  0xa4   :  { %v219_v20 = vadd.f32 %v214_v19, %v122_v18 }
  0xa6   :  { %v349_v21 = vmul.f32 -1.442695, %v219_v20 }
  0xa8   :  { %377 = vpow2.f32 %v349_v21 }
  0xaa   :  { %v124_v22 = vpop.f32.mrf.mxu0 }
  0xab   :  { %v216_v23 = vpop.f32.mrf.mxu1 }
  0xac   :  { %v220_v24 = vadd.f32 %v216_v23, %v124_v22 }
  0xae   :  { %v378_v25 = vpop.eup %377  ;;  %v350_v26 = vmul.f32 -1.442695, %v220_v24 }
  0xaf   :  { %v234_v27 = vadd.f32 1.0, %v378_v25 }
  0xb0   :  { %379 = vpow2.f32 %v350_v26 }
  0xb1   :  { %381 = vrcp.f32 %v234_v27  ;;  %v247_v37 = vand.u32 2147483648, %v234_v27  ;;  %vm241_vm1 = vweird.f32 %v234_v27  ;;  %v245_v38 = vand.u32 2147483647, %v234_v27 }
  0xb3   :  { %v248_v44 = vor.u32 1.1754944e-38, %v247_v37  ;;  %vm246_vm4 = vcmp.eq.f32.partialorder %v245_v38, 8.507059e+37 }
  0xb6   :  { %v380_v28 = vpop.eup %379 }
  0xb7   :  { %v382_v29 = vpop.eup %381  ;;  %v235_v30 = vadd.f32 1.0, %v380_v28 }
  0xb8   :  { %v237_v31 = vmul.f32 %v382_v29, %v234_v27  ;;  %vm242_vm0 = vweird.f32 %v382_v29 }
  0xb9   :  { %383 = vrcp.f32 %v235_v30  ;;  %vm243_vm2 = vmor %vm241_vm1, %vm242_vm0  ;;  %v262_v40 = vand.u32 2147483648, %v235_v30  ;;  %v260_v43 = vand.u32 2147483647, %v235_v30  ;;  %vm256_vm5 = vweird.f32 %v235_v30 }
  0xba   :  { %v238_v32 = vsub.f32 1.0, %v237_v31 }
  0xbb   :  { %v263_v47 = vor.u32 1.1754944e-38, %v262_v40  ;;  %vm261_vm7 = vcmp.eq.f32.partialorder %v260_v43, 8.507059e+37 }
  0xbc   :  { %v239_v33 = vmul.f32 %v382_v29, %v238_v32 }
  0xbe   :  { %v240_v35 = vadd.f32 %v382_v29, %v239_v33 }
  0xbf   :  { %v384_v34 = vpop.eup %383 }
  0xc0   :  { %v252_v36 = vmul.f32 %v384_v34, %v235_v30  ;;  %v244_v41 = vsel %vm243_vm2, %v382_v29, %v240_v35  ;;  %vm257_vm3 = vweird.f32 %v384_v34 }
  0xc1   :  { %v249_v46 = vsel %vm246_vm4, %v248_v44, %v244_v41  ;;  %vm258_vm6 = vmor %vm256_vm5, %vm257_vm3 }
  0xc2   :  { %v253_v39 = vsub.f32 1.0, %v252_v36  ;;  %v266_v50 = vmul.f32 %v249_v46, %v219_v20 }
  0xc4   :  { %v254_v42 = vmul.f32 %v384_v34, %v253_v39 }
  0xc6   :  { %v255_v45 = vadd.f32 %v384_v34, %v254_v42 }
  0xc8   :  { %v259_v48 = vsel %vm258_vm6, %v384_v34, %v255_v45 }
  0xc9   :  { %v264_v49 = vsel %vm261_vm7, %v263_v47, %v259_v48 }
  0xca   :  { %v267_v51 = vmul.f32 %v264_v49, %v220_v24 }
  0xcc   :  { %v372_v52 = vpack.c.bf16 %v267_v51, %v266_v50 }
  0xce   :  { %373 = vst [vmem:[%s479_s4] sm:$0xff] %v372_v52  }
  0xcf   :  { %276 = vsyncpa [#allocation4], 1 }

</bundles_post_ra>
